<compile_context>
chip_gen: v6e
topology: v6e:2x2x1
jax: 0.10.0
libtpu: 0.0.40
codegen_flags: <defaults>
</compile_context>

<pallas_src>
import jax
import jax.numpy as jnp
from jax.experimental import pallas as pl
from jax.experimental.pallas import tpu as pltpu


# ---------------------------------------------------------------------------
# Pass 1: global average pool (AdaptiveAvgPool2d(1)), f32 accumulation.
# ---------------------------------------------------------------------------
def _make_pool_kernel(hw_tile, inv_hw):
    n_lane_chunks = hw_tile // 128 if hw_tile % 128 == 0 else 0

    def pool_kernel(x_ref, y_ref, acc_ref):
        # x_ref: (1, C, hw_tile) block; y_ref: (1, C, 1); acc_ref: (C, 128) f32
        t = pl.program_id(1)

        @pl.when(t == 0)
        def _init():
            acc_ref[...] = jnp.zeros_like(acc_ref)

        if n_lane_chunks > 0:
            # VPU partial sums: add 128-lane chunks elementwise; loads co-issue
            # with the adds, XLU stays idle until the single final reduce.
            for j in range(n_lane_chunks):
                acc_ref[...] += x_ref[0, :, j * 128:(j + 1) * 128].astype(jnp.float32)
        else:
            # Fallback when HW is not 128-aligned (single full-HW tile).
            acc_ref[:, 0:1] += jnp.sum(
                x_ref[0].astype(jnp.float32), axis=-1, keepdims=True)

        @pl.when(t == pl.num_programs(1) - 1)
        def _finalize():
            y_ref[0] = jnp.sum(acc_ref[...], axis=-1, keepdims=True) * inv_hw

    return pool_kernel


# ---------------------------------------------------------------------------
# Pass 2: squeeze-excite FC, batched over B (runs once, full arrays in VMEM).
#   w1t = W1^T (C, hidden), w2t = W2^T (hidden, C)  -- PyTorch nn.Linear weights.
# ---------------------------------------------------------------------------
def _se_fc_kernel(y_ref, w1t_ref, w2t_ref, s_ref):
    y = y_ref[...]                                                   # (B, C) f32
    h = jnp.maximum(
        jnp.dot(y, w1t_ref[...], preferred_element_type=jnp.float32), 0.0)
    s_ref[...] = jax.nn.sigmoid(
        jnp.dot(h, w2t_ref[...], preferred_element_type=jnp.float32))


# ---------------------------------------------------------------------------
# Pass 3: per-channel scaling  x * s  (multiply stays in the input dtype).
# ---------------------------------------------------------------------------
def _scale_kernel(x_ref, s_ref, o_ref):
    x = x_ref[0]                                    # (C, hw_tile), native dtype
    s = s_ref[0].astype(x.dtype)                    # (C, 1) per-channel gate
    o_ref[0] = (x * s).astype(o_ref.dtype)


# ---------------------------------------------------------------------------
# Tile selection: largest 128-multiple divisor of HW within a per-block VMEM
# budget (keeps double-buffered in+out blocks comfortably inside v5e's 16 MiB
# scoped default and v7x's 64 MiB physical VMEM).
# ---------------------------------------------------------------------------
def _pick_hw_tile(HW, C, itemsize, block_bytes=2 * 1024 * 1024, max_lanes=2048):
    if HW % 128 != 0:
        return HW  # non-128-aligned spatial size: single full-HW tile
    budget_lanes = max(128, (block_bytes // max(1, C * itemsize)) // 128 * 128)
    target = min(HW, max_lanes, budget_lanes)
    t = (target // 128) * 128
    while t > 128:
        if HW % t == 0:
            return t
        t -= 128
    return 128


def channel_attention(x, w1, w2, *, hw_tile=None):
    """x: (B, C, H, W); w1: (hidden, C); w2: (C, hidden). Returns (B, C, H, W)."""
    B, C, H, W = x.shape
    HW = H * W
    hidden = w1.shape[0]
    itemsize = jnp.dtype(x.dtype).itemsize
    if hw_tile is None:
        hw_tile = _pick_hw_tile(HW, C, itemsize)
    assert HW % hw_tile == 0, "hw_tile must evenly divide H*W"
    n_hw = HW // hw_tile

    x_flat = x.reshape(B, C, HW)

    # ---- Pass 1: pooled mean, shape (B, C, 1), f32 -------------------------
    pooled = pl.pallas_call(
        _make_pool_kernel(hw_tile, 1.0 / HW),
        out_shape=jax.ShapeDtypeStruct((B, C, 1), jnp.float32),
        grid_spec=pltpu.PrefetchScalarGridSpec(
            num_scalar_prefetch=0,
            grid=(B, n_hw),
            in_specs=[pl.BlockSpec((1, C, hw_tile), lambda b, t: (b, 0, t))],
            out_specs=pl.BlockSpec((1, C, 1), lambda b, t: (b, 0, 0)),
            scratch_shapes=[pltpu.VMEM((C, 128), jnp.float32)],
        ),
        compiler_params=pltpu.CompilerParams(
            dimension_semantics=("parallel", "arbitrary")),
        cost_estimate=pl.CostEstimate(
            flops=B * C * HW,
            transcendentals=0,
            bytes_accessed=B * C * HW * itemsize + B * C * 4),
    )(x_flat)

    # ---- Pass 2: SE FC (tiny, batched over B) ------------------------------
    s = pl.pallas_call(
        _se_fc_kernel,
        out_shape=jax.ShapeDtypeStruct((B, C), jnp.float32),
        cost_estimate=pl.CostEstimate(
            flops=4 * B * C * hidden,
            transcendentals=B * C,
            bytes_accessed=(2 * B * C + 2 * C * hidden) * 4),
    )(pooled[:, :, 0],
      w1.T.astype(jnp.float32),
      w2.T.astype(jnp.float32))

    # ---- Pass 3: scale activations by the per-channel gate -----------------
    out_flat = pl.pallas_call(
        _scale_kernel,
        out_shape=jax.ShapeDtypeStruct((B, C, HW), x.dtype),
        grid_spec=pltpu.PrefetchScalarGridSpec(
            num_scalar_prefetch=0,
            grid=(B, n_hw),
            in_specs=[
                pl.BlockSpec((1, C, hw_tile), lambda b, t: (b, 0, t)),
                pl.BlockSpec((1, C, 1), lambda b, t: (b, 0, 0)),
            ],
            out_specs=pl.BlockSpec((1, C, hw_tile), lambda b, t: (b, 0, t)),
        ),
        compiler_params=pltpu.CompilerParams(
            dimension_semantics=("parallel", "parallel")),
        cost_estimate=pl.CostEstimate(
            flops=B * C * HW,
            transcendentals=0,
            bytes_accessed=2 * B * C * HW * itemsize + B * C * 4),
    )(x_flat, s[:, :, None])

    return out_flat.reshape(B, C, H, W)


if __name__ == "__main__":
    # Small shapes consistent with the module: in_c divisible by r.
    B, C, H, W = 2, 32, 16, 16
    r = 4
    hidden = C // r  # 8

    key = jax.random.PRNGKey(0)
    kx, k1, k2 = jax.random.split(key, 3)

    x = jax.random.normal(kx, (B, C, H, W), dtype=jnp.float32)
    # PyTorch nn.Linear layout: (out_features, in_features), no bias.
    w1 = jax.random.normal(k1, (hidden, C), dtype=jnp.float32) * 0.1  # Linear(C -> hidden)
    w2 = jax.random.normal(k2, (C, hidden), dtype=jnp.float32) * 0.1  # Linear(hidden -> C)

    # Reference (same math as the PyTorch forward).
    y_ref = jnp.mean(x, axis=(2, 3))                    # (B, C)
    h_ref = jnp.maximum(y_ref @ w1.T, 0.0)              # (B, hidden)
    s_ref = jax.nn.sigmoid(h_ref @ w2.T)                # (B, C)
    ref = x * s_ref[:, :, None, None]

    # Run with the auto-picked tile and with a forced smaller tile
    # (HW=256 -> two 128-lane tiles, exercising the multi-tile accumulator path).
    for tile in (None, 128):
        out = channel_attention(x, w1, w2, hw_tile=tile)
        out = jax.block_until_ready(out)
        assert out.shape == x.shape
        assert jnp.allclose(out, ref, atol=1e-4, rtol=1e-4), f"mismatch (hw_tile={tile})"

    print("KERNEL_OK")
</pallas_src>

<mosaic_0001>
module attributes {stable_mosaic.version = 11 : i64} {
  func.func @pool_kernel(%arg0: i32, %arg1: i32, %arg2: memref<1x32x256xf32, #tpu.memory_space<vmem>>, %arg3: memref<1x32x1xf32, #tpu.memory_space<vmem>>, %arg4: memref<32x128xf32, #tpu.memory_space<vmem>>) attributes {dimension_semantics = [#tpu.dimension_semantics<parallel>, #tpu.dimension_semantics<arbitrary>], iteration_bounds = array<i64: 2, 1>, scalar_prefetch = 0 : i64, scratch_operands = 1 : i64, tpu.core_type = #tpu.core_type<tc>, window_params = [{transform_indices = @transform_0, window_bounds = array<i64: 1, 32, 256>}, {transform_indices = @transform_1, window_bounds = array<i64: 1, 32, 1>}]} {
    %c0_i32 = arith.constant 0 : i32
    %0 = arith.cmpi eq, %arg1, %c0_i32 : i32
    %1 = arith.extui %0 : i1 to i32
    %c0_i32_0 = arith.constant 0 : i32
    %2 = arith.cmpi ne, %1, %c0_i32_0 : i32
    scf.if %2 {
      %cst = arith.constant 0.000000e+00 : f32
      %16 = vector.broadcast %cst : f32 to vector<32x128xf32>
      %c0_15 = arith.constant 0 : index
      %c0_16 = arith.constant 0 : index
      %17 = vector.load %arg4[%c0_15, %c0_16] : memref<32x128xf32, #tpu.memory_space<vmem>>, vector<32x128xf32>
      tpu.vector_store %arg4[%c0_15, %c0_16], %16 {strides = array<i32>} : memref<32x128xf32, #tpu.memory_space<vmem>>, vector<32x128xf32>,
    } else {
    }
    %c0 = arith.constant 0 : index
    %c0_1 = arith.constant 0 : index
    %3 = vector.load %arg4[%c0, %c0_1] : memref<32x128xf32, #tpu.memory_space<vmem>>, vector<32x128xf32>
    %c0_2 = arith.constant 0 : index
    %c0_3 = arith.constant 0 : index
    %c0_4 = arith.constant 0 : index
    %4 = vector.load %arg2[%c0_2, %c0_3, %c0_4] : memref<1x32x256xf32, #tpu.memory_space<vmem>>, vector<1x32x128xf32>
    %5 = vector.shape_cast %4 : vector<1x32x128xf32> to vector<32x128xf32>
    %6 = arith.addf %3, %5 : vector<32x128xf32>
    %c0_5 = arith.constant 0 : index
    %c0_6 = arith.constant 0 : index
    %7 = vector.load %arg4[%c0_5, %c0_6] : memref<32x128xf32, #tpu.memory_space<vmem>>, vector<32x128xf32>
    tpu.vector_store %arg4[%c0_5, %c0_6], %6 {strides = array<i32>} : memref<32x128xf32, #tpu.memory_space<vmem>>, vector<32x128xf32>,
    %c0_7 = arith.constant 0 : index
    %c0_8 = arith.constant 0 : index
    %8 = vector.load %arg4[%c0_7, %c0_8] : memref<32x128xf32, #tpu.memory_space<vmem>>, vector<32x128xf32>
    %c0_9 = arith.constant 0 : index
    %c0_10 = arith.constant 0 : index
    %c128 = arith.constant 128 : index
    %9 = vector.load %arg2[%c0_9, %c0_10, %c128] : memref<1x32x256xf32, #tpu.memory_space<vmem>>, vector<1x32x128xf32>
    %10 = vector.shape_cast %9 : vector<1x32x128xf32> to vector<32x128xf32>
    %11 = arith.addf %8, %10 : vector<32x128xf32>
    %c0_11 = arith.constant 0 : index
    %c0_12 = arith.constant 0 : index
    %12 = vector.load %arg4[%c0_11, %c0_12] : memref<32x128xf32, #tpu.memory_space<vmem>>, vector<32x128xf32>
    tpu.vector_store %arg4[%c0_11, %c0_12], %11 {strides = array<i32>} : memref<32x128xf32, #tpu.memory_space<vmem>>, vector<32x128xf32>,
    %c0_i32_13 = arith.constant 0 : i32
    %13 = arith.cmpi eq, %arg1, %c0_i32_13 : i32
    %14 = arith.extui %13 : i1 to i32
    %c0_i32_14 = arith.constant 0 : i32
    %15 = arith.cmpi ne, %14, %c0_i32_14 : i32
    scf.if %15 {
      %c0_15 = arith.constant 0 : index
      %c0_16 = arith.constant 0 : index
      %16 = vector.load %arg4[%c0_15, %c0_16] : memref<32x128xf32, #tpu.memory_space<vmem>>, vector<32x128xf32>
      %cst = arith.constant dense<0.000000e+00> : vector<32xf32>
      %17 = vector.multi_reduction <add>, %16, %cst [1] : vector<32x128xf32> to vector<32xf32>
      %18 = vector.shape_cast %17 : vector<32xf32> to vector<32x1xf32>
      %cst_17 = arith.constant 3.906250e-03 : f32
      %19 = vector.broadcast %cst_17 : f32 to vector<32x1xf32>
      %20 = arith.mulf %18, %19 : vector<32x1xf32>
      %c0_18 = arith.constant 0 : index
      %c0_19 = arith.constant 0 : index
      %c0_20 = arith.constant 0 : index
      %21 = vector.load %arg3[%c0_18, %c0_19, %c0_20] : memref<1x32x1xf32, #tpu.memory_space<vmem>>, vector<1x32x1xf32>
      %22 = vector.shape_cast %21 : vector<1x32x1xf32> to vector<32x1xf32>
      %23 = vector.shape_cast %20 : vector<32x1xf32> to vector<1x32x1xf32>
      tpu.vector_store %arg3[%c0_18, %c0_19, %c0_20], %23 {strides = array<i32>} : memref<1x32x1xf32, #tpu.memory_space<vmem>>, vector<1x32x1xf32>,
    } else {
    }
    return
  }
  func.func @transform_0(%arg0: i32, %arg1: i32) -> (i32, i32, i32) {
    %c0_i32 = arith.constant 0 : i32
    %c0_i32_0 = arith.constant 0 : i32
    return %arg0, %c0_i32, %arg1 : i32, i32, i32
  }
  func.func @transform_1(%arg0: i32, %arg1: i32) -> (i32, i32, i32) {
    %c0_i32 = arith.constant 0 : i32
    %c0_i32_0 = arith.constant 0 : i32
    %c0_i32_1 = arith.constant 0 : i32
    return %arg0, %c0_i32, %c0_i32_0 : i32, i32, i32
  }
}

</mosaic_0001>

<bundles_post_ra>
// kernel: tpu_custom_call.1
= control target key start
LH: loop header
LB: loop body
LE: loop exit
PB: predicated region body
PF: predicated region fallthrough
CT: control target
= control target key end

     0   :  { %6 = vsyncpa [#allocation4], 0  ;;  %s557_s0 = inlined_call_operand.hbm [shape: f32[2,32,256], index: 0, kind: input, shape index: {}]   ;;  %s558_s1 = inlined_call_operand.vmem [shape: f32[2,32,1], index: 1, kind: output, shape index: {}]  }
   0x1   :  { %8 = vsyncpa [#allocation4 + $0x1], 0  ;;  %s461_s6 = smov 0   ;;  %s463_s7 = smov 0  }
   0x2   :  { %s465_s8 = smov 0   ;;  %s467_s9 = smov 0  }
   0x3   :  { %s469_s10 = smov 0   ;;  %s471_s11 = smov 0  }
   0x4 LB: > { %s296_s12 = sadd.s32 4294967295, %s446_s11   ;;  %s26_s13 = sadd.s32 1, %s442_s10  ;;  %s446_s11 = sphi %s471_s11, %s14_s11   ;;  %s442_s10 = sphi %s469_s10, %s566_s10   ;;  %s438_s9 = sphi %s467_s9, %s565_s9   ;;  %s434_s8 = sphi %s465_s8, %s564_s8   ;;  %s430_s7 = sphi %s463_s7, %s563_s7   ;;  %s426_s6 = sphi %s461_s6, %s562_s6  }
   0x5   : > { %p28_p0 = scmp.ge.s32.totalorder %s26_s13, 2  ;;  %s35_s14 = sadd.s32 1, %s434_s8 }
   0x6   : > { %p42_p1 = scmp.ne.s32.totalorder %s434_s8, %s430_s7  ;;  %p43_p2 = scmp.eq.s32.totalorder %s446_s11, 0 }
   0x7   : > { %s568_s13 = smov (%p28_p0, %s26_s13), 0  ;;  %p48_p4 = scmp.ne.s32.totalorder %s430_s7, %s426_s6 }
   0x8   : > { %p497_p3 = por %p43_p2, %p42_p1  ;;  %s30_s16 = ssub.s32 %s442_s10, %s568_s13 }
   0x9   : > { %p49_p5 = scmp.eq.s32.totalorder %s296_s12, 0  ;;  %p33_p6 = scmp.eq.s32.totalorder %s30_s16, 0 }
   0xa   : > { %p317_p8 = scmp.lt.s32.totalorder %s446_s11, 2  ;;  %s98_s19 = sand.u32 1, %s434_s8  }
   0xb   : > { %p504_p7 = por %p49_p5, %p48_p4  ;;  %s309_s20 = sshll.u32 %s442_s10, 10 }
   0xc   : > { %s510_s18 = scalar_select %p33_p6, %s434_s8, %s35_s14  }
   0xd   : > { %s300_s21 = sshll.u32 %s98_s19, 6  ;;  %s110_s24 = scalar_lea.hbm %s557_s0, %s309_s20 }
   0xe   : > { %s102_s25 = scalar_lea.vmem [#allocation3], %s300_s21  ;;  %p519_p9 = pnand %p317_p8, %p497_p3 }
   0xf   : > { %s111_s26 = sshll.u32 %s102_s25, 4  ;;  %s99_s28 = scalar_lea.sflag [#allocation4], %s98_s19  ;;  %s112_s26 = int_to_ptr.vmem [resolvable:$true] %s111_s26 }
  0x10   : > { %p370_p10 = pneg %p519_p9  ;;  %s381_s29 = scalar_lea.vmem %s112_s26, 1024 }
  0x11   : > { %p382_p11 = scmp.ne.s32.totalorder %s112_s26, %s381_s29  ;;  %s448_s30 = smov [#allocation3]  }
  0x12   : > { %s386_s2 = sshll.u32 %s448_s30, 4  ;;  %s387_s2 = int_to_ptr.vmem [resolvable:$false] %s386_s2 }
  0x13   : > { %p384_p12 = pnand %p382_p11, %p370_p10  ;;  %s388_s3 = scalar_lea.vmem %s387_s2, 2048 }
  0x14   : > { %p389_p0 = scmp.lt.s32.totalorder %s112_s26, %s387_s2  ;;  %p390_p1 = scmp.lt.s32.totalorder %s388_s3, %s381_s29 }
  0x15   : > { %p385_p13 = pneg %p384_p12 }
  0x16   : > { %p391_p2 = por %p390_p1, %p389_p0 }
  0x18   : > { %p392_p3 = pnand %p391_p2, %p385_p13 }
  0x1a   : > { %395 = shalt.err (!%p392_p3)
}
  0x1b   : > { %s449_s4 = smov 256   ;;  %s450_s5 = smov 16  }
  0x1c   : > { %316 = dma.hbm_to_vmem [thread:$0]  (!%p519_p9), %s110_s24, 1024, %s112_s26, %s99_s28, %s449_s4, %s449_s4, %s450_s5  }
  0x1d   : > { %p303_p4 = scmp.ge.s32.totalorder %s446_s11, 1  ;;  %p119_p5 = scmp.lt.s32.totalorder %s446_s11, 3 }
  0x1f   : > { %p120_p6 = pnand %p303_p4, %p119_p5 }
  0x20   : > { %s125_s6 = sand.u32 (!%p120_p6), 1, %s430_s7  }
  0x21   : > { %123 = sbr.rel (%p120_p6) target bundleno = 188 (0xbc), region = 24  ;;  %s304_s12 = sshll.u32 (!%p120_p6), %s125_s6, 6 }
  0x22   : > { %s126_s14 = scalar_lea.sflag (!%p120_p6), [#allocation4], %s125_s6  ;;  %s129_s15 = scalar_lea.vmem (!%p120_p6), [#allocation3], %s304_s12 }
  0x26   : > { %421 = dma.done.wait (%p504_p7), %s126_s14, 1024  }
  0x27   : > { %423 = vsyncadd (%p504_p7), %s126_s14, 4294966272  ;;  %v168_v0 = vld [vmem:[%s129_s15 + $0x20] sm:$0xff]  ;;  %v184_v1 = vld [vmem:[%s129_s15 + $0x28] sm:$0xff]  ;;  %p149_p8 = scmp.lt.s32.totalorder %s438_s9, 1  ;;  %vm213_vm0 = vcmask 7168  }
  0x28   : > { %v166_v2 = vld [vmem:[%s129_s15] sm:$0xff]  ;;  %v188_v3 = vadd.f32 %v184_v1, %v168_v0  ;;  %v182_v4 = vld [vmem:[%s129_s15 + $0x8] sm:$0xff]  ;;  %v169_v5 = vld [vmem:[%s129_s15 + $0x30] sm:$0xff] }
  0x29   : > { %v185_v6 = vld [vmem:[%s129_s15 + $0x38] sm:$0xff]  ;;  %v186_v7 = vadd.f32 %v182_v4, %v166_v2  ;;  %v167_v8 = vld [vmem:[%s129_s15 + $0x10] sm:$0xff]  ;;  %s570_s9 = smov (!%p149_p8, %s438_s9), 1 }
  0x2a   : > { %v183_v9 = vld [vmem:[%s129_s15 + $0x18] sm:$0xff]  ;;  %205 = vadd.xlane.f32.xlu1 %v188_v3  ;;  %v189_v10 = vadd.f32 %v185_v6, %v169_v5  ;;  %s310_s16 = sshll.u32 %s570_s9, 5 }
  0x2b   : > { %201 = vadd.xlane.f32.xlu0 %v186_v7  ;;  %v187_v11 = vadd.f32 %v183_v9, %v167_v8  ;;  %s153_s20 = scalar_lea.vmem %s558_s1, %s310_s16 }
  0x2e   : > { %207 = vadd.xlane.f32.xlu1 %v189_v10 }
  0x2f   : > { %203 = vadd.xlane.f32.xlu0 %v187_v11 }
  0xb3   : > { %v206_v12 = vpop.xlane.xlu1 %205 }
  0xb4   : > { %v211_v13 = vmul.f32 0.00390625, %v206_v12  ;;  %v202_v14 = vpop.xlane.xlu0 %201 }
  0xb5   : > { %v209_v15 = vmul.f32 0.00390625, %v202_v14 }
  0xb6   : > { %216 = vst.msk [vmem:[%s153_s20 + $0x10] sm:$0xff] %vm213_vm0, %v211_v13 }
  0xb7   : > { %214 = vst.msk [vmem:[%s153_s20] sm:$0xff] %vm213_vm0, %v209_v15  ;;  %v208_v16 = vpop.xlane.xlu1 %207 }
  0xb8   : > { %v212_v17 = vmul.f32 0.00390625, %v208_v16  ;;  %v204_v18 = vpop.xlane.xlu0 %203 }
  0xb9   : > { %v210_v19 = vmul.f32 0.00390625, %v204_v18 }
  0xba   : > { %217 = vst.msk [vmem:[%s153_s20 + $0x18] sm:$0xff] %vm213_vm0, %v212_v17 }
  0xbb   : > { %215 = vst.msk [vmem:[%s153_s20 + $0x8] sm:$0xff] %vm213_vm0, %v210_v19 }
  0xbc PF: > { %s14_s11 = sadd.s32 1, %s446_s11   ;;  %s562_s6 = smov %s430_s7 }
  0xbd   : > { %p11_p7 = scmp.ge.s32.totalorder %s14_s11, 4   ;;  %s563_s7 = smov %s434_s8 }
  0xbe   : > { %s564_s8 = smov %s510_s18  ;;  %s565_s9 = smov %s442_s10 }
  0xbf   : > { %s566_s10 = smov %s568_s13  ;;  %13 = sbr.rel (!%p11_p7) target bundleno = 4 (0x4), region = 72 }
  0xc4   :  { %239 = vsyncpa [#allocation4], 1 }
  0xc5   :  { %241 = vsyncpa [#allocation4 + $0x1], 1 }

</bundles_post_ra>
